<compile_context>
chip_gen: v7x
topology: tpu7x:2x2x1
jax: 0.10.0
libtpu: 0.0.40
codegen_flags: <defaults>
</compile_context>

<pallas_src>
import numpy as np
import jax
import jax.numpy as jnp
from jax import lax
from jax.experimental import pallas as pl
from jax.experimental.pallas import tpu as pltpu


def _round_up(x, m):
    return ((x + m - 1) // m) * m


# ---------------------------------------------------------------------------
# Bilinear (align_corners=True) interpolation matrix, numpy -> compile const.
# ---------------------------------------------------------------------------
def _bilinear_matrix_np(out_size, in_size):
    m = np.zeros((out_size, in_size), np.float32)
    if out_size == 1 or in_size == 1:
        m[:, 0] = 1.0
        return m
    scale = (in_size - 1) / (out_size - 1)
    for o in range(out_size):
        s = o * scale
        i0 = min(int(np.floor(s)), in_size - 1)
        i1 = min(i0 + 1, in_size - 1)
        f = s - i0
        m[o, i0] += 1.0 - f
        m[o, i1] += f
    return m


# ---------------------------------------------------------------------------
# Fused kernel (one batch element per grid step).  All activations are 2-D
# (C, L) with L a multiple of 128 ("q-layout": flat index q = r*(W+2) + c so
# the 9 conv taps are constant lane offsets into the even-grid stream).
# ---------------------------------------------------------------------------
def _make_acsm_kernel(wq, lo):
    def kernel(xq_ref, xlq_ref, xe_ref,
               ws_ref, bs_ref, ws2_ref, bs2_ref,
               w3_ref, b3_ref, wt_ref, ct_ref, sc_ref,
               o_ref):
        f32 = jnp.float32

        xq = xq_ref[0]       # (C_mid,  Lo) bf16, x in q-layout
        xlq = xlq_ref[0]     # (C_low,  Lo) bf16, bilinearly-upsampled x_low
        xe = xe_ref[0]       # (C_high, Lx) bf16, padded even grid of x_high

        # skips (1x1 conv on x)
        d = jnp.dot(ws_ref[...], xq, preferred_element_type=f32) + bs_ref[...]

        # skips_2 (1x1 conv) on the already-upsampled x_low (conv/upsample commute)
        p = jnp.dot(ws2_ref[...], xlq, preferred_element_type=f32) + bs2_ref[...]

        # skips_3 (3x3, stride 2, dilation 2, pad 2): 9 shifted lane views of the
        # ONCE-streamed even grid, each feeding an accumulating MXU dot.
        hi = jnp.dot(w3_ref[0], xe[:, 0:lo], preferred_element_type=f32)
        for k in range(1, 9):
            s = (k // 3) * wq + (k % 3)          # shift = ky*(W+2) + kx
            hi = hi + jnp.dot(w3_ref[k], xe[:, s:s + lo],
                              preferred_element_type=f32)
        hi = hi + b3_ref[...]

        # Bag (channel chunking in the module is an order-preserving no-op):
        #   edge*p + (1-edge)*hi == hi + edge*(p - hi)
        edge = pl.reciprocal(1.0 + jnp.exp(-d), approx=True)
        m = hi + edge * (p - hi)

        # tail_conv + residual + BatchNorm (eval, folded) + SiLU:
        #   y = (scale*Wt)@m + (scale*b_tail + shift) + scale*d
        y = jnp.dot(wt_ref[...], m.astype(jnp.bfloat16),
                    preferred_element_type=f32)
        y = y + ct_ref[...] + sc_ref[...] * d
        o_ref[0] = y * pl.reciprocal(1.0 + jnp.exp(-y), approx=True)

    return kernel


# ---------------------------------------------------------------------------
# Wrapper: cheap single-pass layout prep (all casts fuse with their producing
# pad/slice/upsample op) + one pallas_call.
# ---------------------------------------------------------------------------
def acsm_forward_pallas(x_low, x, x_high, kp):
    """Inputs NCHW float32; returns NCHW float32 of shape (N, C_out, H, W)."""
    n, c_mid, h, w = x.shape
    _, c_low, hl, wl = x_low.shape
    _, c_high, hh, wh = x_high.shape
    c = kp["ws"].shape[0]
    assert hh == 2 * h and wh == 2 * w, \
        "skips_3 (k=3, s=2, d=2, p=2) must map x_high spatial onto x spatial"

    bf16 = jnp.bfloat16

    # ---- q-layout geometry ------------------------------------------------
    wq = w + 2                              # padded row width (kx shifts 0..2)
    lq = h * wq                             # flat length covering every valid q
    lo = _round_up(lq, 128)                 # lane-dense working length
    lx = _round_up(lo + 2 * wq + 2, 128)    # even-grid length incl. max tap shift

    # ---- x -> q-layout, bf16 ------------------------------------------------
    xq = jnp.pad(x, ((0, 0), (0, 0), (0, 0), (0, wq - w))).reshape(n, c_mid, lq)
    xq = jnp.pad(xq, ((0, 0), (0, 0), (0, lo - lq))).astype(bf16)

    # ---- x_low -> separable bilinear (align_corners=True) upsample, q-layout --
    mh = jnp.asarray(_bilinear_matrix_np(h, hl))
    mw = jnp.asarray(_bilinear_matrix_np(w, wl))
    xl_up = jnp.einsum("oh,pw,nchw->ncop", mh, mw, x_low)          # (n,c_low,h,w) f32
    xlq = jnp.pad(xl_up, ((0, 0), (0, 0), (0, 0), (0, wq - w))).reshape(n, c_low, lq)
    xlq = jnp.pad(xlq, ((0, 0), (0, 0), (0, lo - lq))).astype(bf16)

    # ---- x_high -> padded even grid, flat q-layout, streamed ONCE ------------
    xe = jnp.pad(x_high[:, :, ::2, ::2], ((0, 0), (0, 0), (1, 1), (1, 1)))
    xe = xe.reshape(n, c_high, (h + 2) * wq)
    xe = jnp.pad(xe, ((0, 0), (0, 0), (0, lx - (h + 2) * wq))).astype(bf16)

    # ---- VMEM budget: streamed blocks (x2 double buffer) + resident weights
    #      + live f32 intermediates, 25% headroom, capped by device VMEM. -----
    bytes_stream = 2 * 2 * (c_mid * lo + c_low * lo + c_high * lx)   # bf16 inputs
    bytes_out = 2 * 4 * c * lo                                       # f32 output
    bytes_wts = 2 * (2 * (c * c_mid + c * c_low + 9 * c * c_high + c * c)
                     + 4 * 5 * c)
    bytes_live = 6 * 4 * c * lo                                      # d,p,hi,edge,m,y
    need = int(1.25 * (bytes_stream + bytes_out + bytes_wts + bytes_live))
    try:
        vmem_cap = int(pltpu.get_tpu_info().vmem_capacity_bytes)
    except Exception:                                # noqa: BLE001 - trace-time probe
        vmem_cap = 64 * 2 ** 20                      # v7x floor
    vmem_limit = min(max(need, 32 * 2 ** 20), int(0.9 * vmem_cap))

    cost = pl.CostEstimate(
        flops=2 * n * lo * c * (c_mid + c_low + 9 * c_high + c),
        transcendentals=2 * n * c * lo,
        bytes_accessed=n * (bytes_stream // 2 + bytes_out // 2) + bytes_wts // 2)

    out = pl.pallas_call(
        _make_acsm_kernel(wq, lo),
        out_shape=jax.ShapeDtypeStruct((n, c, lo), jnp.float32),
        grid=(n,),
        in_specs=[
            pl.BlockSpec((1, c_mid, lo), lambda b: (b, 0, 0)),       # x (q-layout)
            pl.BlockSpec((1, c_low, lo), lambda b: (b, 0, 0)),       # upsampled x_low
            pl.BlockSpec((1, c_high, lx), lambda b: (b, 0, 0)),      # even grid
            pl.BlockSpec((c, c_mid), lambda b: (0, 0)),              # w_skips
            pl.BlockSpec((c, 1), lambda b: (0, 0)),                  # b_skips
            pl.BlockSpec((c, c_low), lambda b: (0, 0)),              # w_skips2
            pl.BlockSpec((c, 1), lambda b: (0, 0)),                  # b_skips2
            pl.BlockSpec((9, c, c_high), lambda b: (0, 0, 0)),       # w_skips3 taps
            pl.BlockSpec((c, 1), lambda b: (0, 0)),                  # b_skips3
            pl.BlockSpec((c, c), lambda b: (0, 0)),                  # folded tail W (bf16)
            pl.BlockSpec((c, 1), lambda b: (0, 0)),                  # folded tail const
            pl.BlockSpec((c, 1), lambda b: (0, 0)),                  # bn scale
        ],
        out_specs=pl.BlockSpec((1, c, lo), lambda b: (b, 0, 0)),
        compiler_params=pltpu.CompilerParams(
            dimension_semantics=("parallel",),
            vmem_limit_bytes=vmem_limit),
        cost_estimate=cost,
    )(xq, xlq, xe, kp["ws"], kp["bs"], kp["ws2"], kp["bs2"],
      kp["w3k"], kp["b3"], kp["wtf"], kp["ct"], kp["sc"])

    # un-q-layout: drop lane padding and the 2 junk columns per row
    return out[:, :, :lq].reshape(n, c, h, wq)[:, :, :, :w]


# ---------------------------------------------------------------------------
# Parameter prep: torch-like params -> kernel operands (BN folded, bf16 dots).
# ---------------------------------------------------------------------------
def prepare_kernel_params(p, eps=1e-5):
    bf16, f32 = jnp.bfloat16, jnp.float32
    c, c_high = p["w_skips3"].shape[0], p["w_skips3"].shape[1]
    scale = p["bn_gamma"] / jnp.sqrt(p["bn_var"] + eps)
    shift = p["bn_beta"] - scale * p["bn_mean"]
    # (C, C_high, 3, 3) -> (9, C, C_high), k = ky*3 + kx
    w3k = jnp.transpose(p["w_skips3"], (2, 3, 0, 1)).reshape(9, c, c_high)
    return dict(
        ws=p["w_skips"].astype(bf16),
        bs=p["b_skips"].astype(f32)[:, None],
        ws2=p["w_skips2"].astype(bf16),
        bs2=p["b_skips2"].astype(f32)[:, None],
        w3k=w3k.astype(bf16),
        b3=p["b_skips3"].astype(f32)[:, None],
        wtf=(scale[:, None] * p["w_tail"]).astype(bf16),   # bf16 tail weight
        ct=(scale * p["b_tail"] + shift).astype(f32)[:, None],
        sc=scale.astype(f32)[:, None],
    )


# ---------------------------------------------------------------------------
# Pure-JAX, module-faithful f32 reference (for the correctness check).
# ---------------------------------------------------------------------------
def acsm_reference(x_low, x, x_high, p, eps=1e-5):
    h, w = x.shape[2], x.shape[3]
    d = jnp.einsum("oc,nchw->nohw", p["w_skips"], x) + p["b_skips"][None, :, None, None]
    low = (jnp.einsum("oc,nchw->nohw", p["w_skips2"], x_low)
           + p["b_skips2"][None, :, None, None])
    mh = jnp.asarray(_bilinear_matrix_np(h, x_low.shape[2]))
    mw = jnp.asarray(_bilinear_matrix_np(w, x_low.shape[3]))
    low = jnp.einsum("oh,pw,nchw->ncop", mh, mw, low)
    hi = lax.conv_general_dilated(
        x_high, p["w_skips3"], window_strides=(2, 2),
        padding=((2, 2), (2, 2)), rhs_dilation=(2, 2),
        dimension_numbers=("NCHW", "OIHW", "NCHW"),
    ) + p["b_skips3"][None, :, None, None]
    edge = jax.nn.sigmoid(d)
    m = edge * low + (1.0 - edge) * hi            # chunk/concat == elementwise
    y = jnp.einsum("oc,nchw->nohw", p["w_tail"], m) + p["b_tail"][None, :, None, None]
    y = y + d
    scale = p["bn_gamma"] / jnp.sqrt(p["bn_var"] + eps)
    y = (y - p["bn_mean"][None, :, None, None]) * scale[None, :, None, None] \
        + p["bn_beta"][None, :, None, None]
    return y * jax.nn.sigmoid(y)


# ---------------------------------------------------------------------------
# Deterministic synthetic parameters (torch-like layout / shapes).
# ---------------------------------------------------------------------------
def make_params(in_features, out_features, key):
    c_low, c_mid, c_high = in_features
    c = out_features
    ks = jax.random.split(key, 12)
    return dict(
        w_skips=0.1 * jax.random.normal(ks[0], (c, c_mid), jnp.float32),
        b_skips=0.1 * jax.random.normal(ks[1], (c,), jnp.float32),
        w_skips2=0.1 * jax.random.normal(ks[2], (c, c_low), jnp.float32),
        b_skips2=0.1 * jax.random.normal(ks[3], (c,), jnp.float32),
        w_skips3=0.1 * jax.random.normal(ks[4], (c, c_high, 3, 3), jnp.float32),
        b_skips3=0.1 * jax.random.normal(ks[5], (c,), jnp.float32),
        w_tail=0.1 * jax.random.normal(ks[6], (c, c), jnp.float32),
        b_tail=0.1 * jax.random.normal(ks[7], (c,), jnp.float32),
        bn_gamma=1.0 + 0.1 * jax.random.normal(ks[8], (c,), jnp.float32),
        bn_beta=0.1 * jax.random.normal(ks[9], (c,), jnp.float32),
        bn_mean=0.1 * jax.random.normal(ks[10], (c,), jnp.float32),
        bn_var=0.5 + jnp.abs(jax.random.normal(ks[11], (c,), jnp.float32)),
    )


# ---------------------------------------------------------------------------
if __name__ == "__main__":
    key = jax.random.PRNGKey(0)
    k_par, k_low, k_mid, k_high = jax.random.split(key, 4)

    in_features = [4, 4, 4]          # [C_low, C_mid, C_high]
    out_features = 8
    n, h, w = 2, 16, 16

    # x_high spatial must be 2x x's spatial for skips_3 (stride=2) to align.
    x_low = jax.random.normal(k_low, (n, in_features[0], h // 2, w // 2), jnp.float32)
    x = jax.random.normal(k_mid, (n, in_features[1], h, w), jnp.float32)
    x_high = jax.random.normal(k_high, (n, in_features[2], 2 * h, 2 * w), jnp.float32)

    params = make_params(in_features, out_features, k_par)
    kparams = prepare_kernel_params(params)

    fwd = jax.jit(acsm_forward_pallas)
    out = jax.block_until_ready(fwd(x_low, x, x_high, kparams))
    assert out.shape == (n, out_features, h, w)

    ref = jax.block_until_ready(acsm_reference(x_low, x, x_high, params))
    # tolerance reflects bf16 MXU inputs + approx reciprocal vs. the f32 reference
    np.testing.assert_allclose(np.asarray(out), np.asarray(ref),
                               rtol=2e-2, atol=3e-2)
    print("KERNEL_OK")
</pallas_src>

<mosaic_0001>
module attributes {stable_mosaic.version = 11 : i64} {
  func.func @kernel(%arg0: i32, %arg1: memref<1x4x384xbf16, #tpu.memory_space<vmem>>, %arg2: memref<1x4x384xbf16, #tpu.memory_space<vmem>>, %arg3: memref<1x4x512xbf16, #tpu.memory_space<vmem>>, %arg4: memref<8x4xbf16, #tpu.memory_space<vmem>>, %arg5: memref<8x1xf32, #tpu.memory_space<vmem>>, %arg6: memref<8x4xbf16, #tpu.memory_space<vmem>>, %arg7: memref<8x1xf32, #tpu.memory_space<vmem>>, %arg8: memref<9x8x4xbf16, #tpu.memory_space<vmem>>, %arg9: memref<8x1xf32, #tpu.memory_space<vmem>>, %arg10: memref<8x8xbf16, #tpu.memory_space<vmem>>, %arg11: memref<8x1xf32, #tpu.memory_space<vmem>>, %arg12: memref<8x1xf32, #tpu.memory_space<vmem>>, %arg13: memref<1x8x384xf32, #tpu.memory_space<vmem>>) attributes {dimension_semantics = [#tpu.dimension_semantics<parallel>], iteration_bounds = array<i64: 2>, scalar_prefetch = 0 : i64, scratch_operands = 0 : i64, tpu.core_type = #tpu.core_type<tc>, window_params = [{transform_indices = @transform_0, window_bounds = array<i64: 1, 4, 384>}, {transform_indices = @transform_1, window_bounds = array<i64: 1, 4, 384>}, {transform_indices = @transform_2, window_bounds = array<i64: 1, 4, 512>}, {pipeline_mode = #tpu.pipeline_mode<synchronous>, transform_indices = @transform_3, window_bounds = array<i64: 8, 4>}, {pipeline_mode = #tpu.pipeline_mode<synchronous>, transform_indices = @transform_4, window_bounds = array<i64: 8, 1>}, {pipeline_mode = #tpu.pipeline_mode<synchronous>, transform_indices = @transform_5, window_bounds = array<i64: 8, 4>}, {pipeline_mode = #tpu.pipeline_mode<synchronous>, transform_indices = @transform_6, window_bounds = array<i64: 8, 1>}, {pipeline_mode = #tpu.pipeline_mode<synchronous>, transform_indices = @transform_7, window_bounds = array<i64: 9, 8, 4>}, {pipeline_mode = #tpu.pipeline_mode<synchronous>, transform_indices = @transform_8, window_bounds = array<i64: 8, 1>}, {pipeline_mode = #tpu.pipeline_mode<synchronous>, transform_indices = @transform_9, window_bounds = array<i64: 8, 8>}, {pipeline_mode = #tpu.pipeline_mode<synchronous>, transform_indices = @transform_10, window_bounds = array<i64: 8, 1>}, {pipeline_mode = #tpu.pipeline_mode<synchronous>, transform_indices = @transform_11, window_bounds = array<i64: 8, 1>}, {transform_indices = @transform_12, window_bounds = array<i64: 1, 8, 384>}]} {
    %c0 = arith.constant 0 : index
    %c0_0 = arith.constant 0 : index
    %c0_1 = arith.constant 0 : index
    %0 = vector.load %arg1[%c0, %c0_0, %c0_1] : memref<1x4x384xbf16, #tpu.memory_space<vmem>>, vector<1x4x384xbf16>
    %1 = vector.shape_cast %0 : vector<1x4x384xbf16> to vector<4x384xbf16>
    %c0_2 = arith.constant 0 : index
    %c0_3 = arith.constant 0 : index
    %c0_4 = arith.constant 0 : index
    %2 = vector.load %arg2[%c0_2, %c0_3, %c0_4] : memref<1x4x384xbf16, #tpu.memory_space<vmem>>, vector<1x4x384xbf16>
    %3 = vector.shape_cast %2 : vector<1x4x384xbf16> to vector<4x384xbf16>
    %c0_5 = arith.constant 0 : index
    %c0_6 = arith.constant 0 : index
    %c0_7 = arith.constant 0 : index
    %4 = vector.load %arg3[%c0_5, %c0_6, %c0_7] : memref<1x4x512xbf16, #tpu.memory_space<vmem>>, vector<1x4x512xbf16>
    %5 = vector.shape_cast %4 : vector<1x4x512xbf16> to vector<4x512xbf16>
    %c0_8 = arith.constant 0 : index
    %c0_9 = arith.constant 0 : index
    %6 = vector.load %arg4[%c0_8, %c0_9] : memref<8x4xbf16, #tpu.memory_space<vmem>>, vector<8x4xbf16>
    %cst = arith.constant dense<0.000000e+00> : vector<8x384xf32>
    %7 = tpu.matmul %6, %1, %cst {dimension_numbers = #tpu.dot_dimension_numbers<[1], [0], [0], [1], [0, 0, 1, 1], [], []>} : vector<8x4xbf16>, vector<4x384xbf16>, vector<8x384xf32> -> vector<8x384xf32>
    %c0_10 = arith.constant 0 : index
    %c0_11 = arith.constant 0 : index
    %8 = vector.load %arg5[%c0_10, %c0_11] : memref<8x1xf32, #tpu.memory_space<vmem>>, vector<8x1xf32>
    %9 = vector.broadcast %8 : vector<8x1xf32> to vector<8x384xf32>
    %10 = arith.addf %7, %9 : vector<8x384xf32>
    %c0_12 = arith.constant 0 : index
    %c0_13 = arith.constant 0 : index
    %11 = vector.load %arg6[%c0_12, %c0_13] : memref<8x4xbf16, #tpu.memory_space<vmem>>, vector<8x4xbf16>
    %cst_14 = arith.constant dense<0.000000e+00> : vector<8x384xf32>
    %12 = tpu.matmul %11, %3, %cst_14 {dimension_numbers = #tpu.dot_dimension_numbers<[1], [0], [0], [1], [0, 0, 1, 1], [], []>} : vector<8x4xbf16>, vector<4x384xbf16>, vector<8x384xf32> -> vector<8x384xf32>
    %c0_15 = arith.constant 0 : index
    %c0_16 = arith.constant 0 : index
    %13 = vector.load %arg7[%c0_15, %c0_16] : memref<8x1xf32, #tpu.memory_space<vmem>>, vector<8x1xf32>
    %14 = vector.broadcast %13 : vector<8x1xf32> to vector<8x384xf32>
    %15 = arith.addf %12, %14 : vector<8x384xf32>
    %c0_17 = arith.constant 0 : index
    %c0_18 = arith.constant 0 : index
    %c0_19 = arith.constant 0 : index
    %16 = vector.load %arg8[%c0_17, %c0_18, %c0_19] : memref<9x8x4xbf16, #tpu.memory_space<vmem>>, vector<1x8x4xbf16>
    %17 = vector.shape_cast %16 : vector<1x8x4xbf16> to vector<8x4xbf16>
    %18 = vector.extract_strided_slice %5 {offsets = [0, 0], sizes = [4, 384], strides = [1, 1]} : vector<4x512xbf16> to vector<4x384xbf16>
    %cst_20 = arith.constant dense<0.000000e+00> : vector<8x384xf32>
    %19 = tpu.matmul %17, %18, %cst_20 {dimension_numbers = #tpu.dot_dimension_numbers<[1], [0], [0], [1], [0, 0, 1, 1], [], []>} : vector<8x4xbf16>, vector<4x384xbf16>, vector<8x384xf32> -> vector<8x384xf32>
    %c1 = arith.constant 1 : index
    %c0_21 = arith.constant 0 : index
    %c0_22 = arith.constant 0 : index
    %20 = vector.load %arg8[%c1, %c0_21, %c0_22] : memref<9x8x4xbf16, #tpu.memory_space<vmem>>, vector<1x8x4xbf16>
    %21 = vector.shape_cast %20 : vector<1x8x4xbf16> to vector<8x4xbf16>
    %22 = vector.extract_strided_slice %5 {offsets = [0, 1], sizes = [4, 384], strides = [1, 1]} : vector<4x512xbf16> to vector<4x384xbf16>
    %cst_23 = arith.constant dense<0.000000e+00> : vector<8x384xf32>
    %23 = tpu.matmul %21, %22, %cst_23 {dimension_numbers = #tpu.dot_dimension_numbers<[1], [0], [0], [1], [0, 0, 1, 1], [], []>} : vector<8x4xbf16>, vector<4x384xbf16>, vector<8x384xf32> -> vector<8x384xf32>
    %24 = arith.addf %19, %23 : vector<8x384xf32>
    %c2 = arith.constant 2 : index
    %c0_24 = arith.constant 0 : index
    %c0_25 = arith.constant 0 : index
    %25 = vector.load %arg8[%c2, %c0_24, %c0_25] : memref<9x8x4xbf16, #tpu.memory_space<vmem>>, vector<1x8x4xbf16>
    %26 = vector.shape_cast %25 : vector<1x8x4xbf16> to vector<8x4xbf16>
    %27 = vector.extract_strided_slice %5 {offsets = [0, 2], sizes = [4, 384], strides = [1, 1]} : vector<4x512xbf16> to vector<4x384xbf16>
    %cst_26 = arith.constant dense<0.000000e+00> : vector<8x384xf32>
    %28 = tpu.matmul %26, %27, %cst_26 {dimension_numbers = #tpu.dot_dimension_numbers<[1], [0], [0], [1], [0, 0, 1, 1], [], []>} : vector<8x4xbf16>, vector<4x384xbf16>, vector<8x384xf32> -> vector<8x384xf32>
    %29 = arith.addf %24, %28 : vector<8x384xf32>
    %c3 = arith.constant 3 : index
    %c0_27 = arith.constant 0 : index
    %c0_28 = arith.constant 0 : index
    %30 = vector.load %arg8[%c3, %c0_27, %c0_28] : memref<9x8x4xbf16, #tpu.memory_space<vmem>>, vector<1x8x4xbf16>
    %31 = vector.shape_cast %30 : vector<1x8x4xbf16> to vector<8x4xbf16>
    %32 = vector.extract_strided_slice %5 {offsets = [0, 18], sizes = [4, 384], strides = [1, 1]} : vector<4x512xbf16> to vector<4x384xbf16>
    %cst_29 = arith.constant dense<0.000000e+00> : vector<8x384xf32>
    %33 = tpu.matmul %31, %32, %cst_29 {dimension_numbers = #tpu.dot_dimension_numbers<[1], [0], [0], [1], [0, 0, 1, 1], [], []>} : vector<8x4xbf16>, vector<4x384xbf16>, vector<8x384xf32> -> vector<8x384xf32>
    %34 = arith.addf %29, %33 : vector<8x384xf32>
    %c4 = arith.constant 4 : index
    %c0_30 = arith.constant 0 : index
    %c0_31 = arith.constant 0 : index
    %35 = vector.load %arg8[%c4, %c0_30, %c0_31] : memref<9x8x4xbf16, #tpu.memory_space<vmem>>, vector<1x8x4xbf16>
    %36 = vector.shape_cast %35 : vector<1x8x4xbf16> to vector<8x4xbf16>
    %37 = vector.extract_strided_slice %5 {offsets = [0, 19], sizes = [4, 384], strides = [1, 1]} : vector<4x512xbf16> to vector<4x384xbf16>
    %cst_32 = arith.constant dense<0.000000e+00> : vector<8x384xf32>
    %38 = tpu.matmul %36, %37, %cst_32 {dimension_numbers = #tpu.dot_dimension_numbers<[1], [0], [0], [1], [0, 0, 1, 1], [], []>} : vector<8x4xbf16>, vector<4x384xbf16>, vector<8x384xf32> -> vector<8x384xf32>
    %39 = arith.addf %34, %38 : vector<8x384xf32>
    %c5 = arith.constant 5 : index
    %c0_33 = arith.constant 0 : index
    %c0_34 = arith.constant 0 : index
    %40 = vector.load %arg8[%c5, %c0_33, %c0_34] : memref<9x8x4xbf16, #tpu.memory_space<vmem>>, vector<1x8x4xbf16>
    %41 = vector.shape_cast %40 : vector<1x8x4xbf16> to vector<8x4xbf16>
    %42 = vector.extract_strided_slice %5 {offsets = [0, 20], sizes = [4, 384], strides = [1, 1]} : vector<4x512xbf16> to vector<4x384xbf16>
    %cst_35 = arith.constant dense<0.000000e+00> : vector<8x384xf32>
    %43 = tpu.matmul %41, %42, %cst_35 {dimension_numbers = #tpu.dot_dimension_numbers<[1], [0], [0], [1], [0, 0, 1, 1], [], []>} : vector<8x4xbf16>, vector<4x384xbf16>, vector<8x384xf32> -> vector<8x384xf32>
    %44 = arith.addf %39, %43 : vector<8x384xf32>
    %c6 = arith.constant 6 : index
    %c0_36 = arith.constant 0 : index
    %c0_37 = arith.constant 0 : index
    %45 = vector.load %arg8[%c6, %c0_36, %c0_37] : memref<9x8x4xbf16, #tpu.memory_space<vmem>>, vector<1x8x4xbf16>
    %46 = vector.shape_cast %45 : vector<1x8x4xbf16> to vector<8x4xbf16>
    %47 = vector.extract_strided_slice %5 {offsets = [0, 36], sizes = [4, 384], strides = [1, 1]} : vector<4x512xbf16> to vector<4x384xbf16>
    %cst_38 = arith.constant dense<0.000000e+00> : vector<8x384xf32>
    %48 = tpu.matmul %46, %47, %cst_38 {dimension_numbers = #tpu.dot_dimension_numbers<[1], [0], [0], [1], [0, 0, 1, 1], [], []>} : vector<8x4xbf16>, vector<4x384xbf16>, vector<8x384xf32> -> vector<8x384xf32>
    %49 = arith.addf %44, %48 : vector<8x384xf32>
    %c7 = arith.constant 7 : index
    %c0_39 = arith.constant 0 : index
    %c0_40 = arith.constant 0 : index
    %50 = vector.load %arg8[%c7, %c0_39, %c0_40] : memref<9x8x4xbf16, #tpu.memory_space<vmem>>, vector<1x8x4xbf16>
    %51 = vector.shape_cast %50 : vector<1x8x4xbf16> to vector<8x4xbf16>
    %52 = vector.extract_strided_slice %5 {offsets = [0, 37], sizes = [4, 384], strides = [1, 1]} : vector<4x512xbf16> to vector<4x384xbf16>
    %cst_41 = arith.constant dense<0.000000e+00> : vector<8x384xf32>
    %53 = tpu.matmul %51, %52, %cst_41 {dimension_numbers = #tpu.dot_dimension_numbers<[1], [0], [0], [1], [0, 0, 1, 1], [], []>} : vector<8x4xbf16>, vector<4x384xbf16>, vector<8x384xf32> -> vector<8x384xf32>
    %54 = arith.addf %49, %53 : vector<8x384xf32>
    %c8 = arith.constant 8 : index
    %c0_42 = arith.constant 0 : index
    %c0_43 = arith.constant 0 : index
    %55 = vector.load %arg8[%c8, %c0_42, %c0_43] : memref<9x8x4xbf16, #tpu.memory_space<vmem>>, vector<1x8x4xbf16>
    %56 = vector.shape_cast %55 : vector<1x8x4xbf16> to vector<8x4xbf16>
    %57 = vector.extract_strided_slice %5 {offsets = [0, 38], sizes = [4, 384], strides = [1, 1]} : vector<4x512xbf16> to vector<4x384xbf16>
    %cst_44 = arith.constant dense<0.000000e+00> : vector<8x384xf32>
    %58 = tpu.matmul %56, %57, %cst_44 {dimension_numbers = #tpu.dot_dimension_numbers<[1], [0], [0], [1], [0, 0, 1, 1], [], []>} : vector<8x4xbf16>, vector<4x384xbf16>, vector<8x384xf32> -> vector<8x384xf32>
    %59 = arith.addf %54, %58 : vector<8x384xf32>
    %c0_45 = arith.constant 0 : index
    %c0_46 = arith.constant 0 : index
    %60 = vector.load %arg9[%c0_45, %c0_46] : memref<8x1xf32, #tpu.memory_space<vmem>>, vector<8x1xf32>
    %61 = vector.broadcast %60 : vector<8x1xf32> to vector<8x384xf32>
    %62 = arith.addf %59, %61 : vector<8x384xf32>
    %cst_47 = arith.constant 0.000000e+00 : f32
    %63 = vector.broadcast %cst_47 : f32 to vector<8x384xf32>
    %64 = arith.subf %63, %10 : vector<8x384xf32>
    %65 = math.exp %64 : vector<8x384xf32>
    %cst_48 = arith.constant 1.000000e+00 : f32
    %66 = vector.broadcast %cst_48 : f32 to vector<8x384xf32>
    %67 = arith.addf %66, %65 : vector<8x384xf32>
    %68 = tpu.reciprocal %67 {approx = true} : vector<8x384xf32> -> vector<8x384xf32>
    %69 = arith.subf %15, %62 : vector<8x384xf32>
    %70 = arith.mulf %68, %69 : vector<8x384xf32>
    %71 = arith.addf %62, %70 : vector<8x384xf32>
    %c0_49 = arith.constant 0 : index
    %c0_50 = arith.constant 0 : index
    %72 = vector.load %arg10[%c0_49, %c0_50] : memref<8x8xbf16, #tpu.memory_space<vmem>>, vector<8x8xbf16>
    %73 = arith.truncf %71 : vector<8x384xf32> to vector<8x384xbf16>
    %cst_51 = arith.constant dense<0.000000e+00> : vector<8x384xf32>
    %74 = tpu.matmul %72, %73, %cst_51 {dimension_numbers = #tpu.dot_dimension_numbers<[1], [0], [0], [1], [0, 0, 1, 1], [], []>} : vector<8x8xbf16>, vector<8x384xbf16>, vector<8x384xf32> -> vector<8x384xf32>
    %c0_52 = arith.constant 0 : index
    %c0_53 = arith.constant 0 : index
    %75 = vector.load %arg11[%c0_52, %c0_53] : memref<8x1xf32, #tpu.memory_space<vmem>>, vector<8x1xf32>
    %76 = vector.broadcast %75 : vector<8x1xf32> to vector<8x384xf32>
    %77 = arith.addf %74, %76 : vector<8x384xf32>
    %c0_54 = arith.constant 0 : index
    %c0_55 = arith.constant 0 : index
    %78 = vector.load %arg12[%c0_54, %c0_55] : memref<8x1xf32, #tpu.memory_space<vmem>>, vector<8x1xf32>
    %79 = vector.broadcast %78 : vector<8x1xf32> to vector<8x384xf32>
    %80 = arith.mulf %79, %10 : vector<8x384xf32>
    %81 = arith.addf %77, %80 : vector<8x384xf32>
    %cst_56 = arith.constant 0.000000e+00 : f32
    %82 = vector.broadcast %cst_56 : f32 to vector<8x384xf32>
    %83 = arith.subf %82, %81 : vector<8x384xf32>
    %84 = math.exp %83 : vector<8x384xf32>
    %cst_57 = arith.constant 1.000000e+00 : f32
    %85 = vector.broadcast %cst_57 : f32 to vector<8x384xf32>
    %86 = arith.addf %85, %84 : vector<8x384xf32>
    %87 = tpu.reciprocal %86 {approx = true} : vector<8x384xf32> -> vector<8x384xf32>
    %88 = arith.mulf %81, %87 : vector<8x384xf32>
    %c0_58 = arith.constant 0 : index
    %c0_59 = arith.constant 0 : index
    %c0_60 = arith.constant 0 : index
    %89 = vector.load %arg13[%c0_58, %c0_59, %c0_60] : memref<1x8x384xf32, #tpu.memory_space<vmem>>, vector<1x8x384xf32>
    %90 = vector.shape_cast %89 : vector<1x8x384xf32> to vector<8x384xf32>
    %91 = vector.shape_cast %88 : vector<8x384xf32> to vector<1x8x384xf32>
    tpu.vector_store %arg13[%c0_58, %c0_59, %c0_60], %91 {strides = array<i32>} : memref<1x8x384xf32, #tpu.memory_space<vmem>>, vector<1x8x384xf32>,
    return
  }
  func.func @transform_0(%arg0: i32) -> (i32, i32, i32) {
    %c0_i32 = arith.constant 0 : i32
    %c0_i32_0 = arith.constant 0 : i32
    %c0_i32_1 = arith.constant 0 : i32
    return %arg0, %c0_i32, %c0_i32_0 : i32, i32, i32
  }
  func.func @transform_1(%arg0: i32) -> (i32, i32, i32) {
    %c0_i32 = arith.constant 0 : i32
    %c0_i32_0 = arith.constant 0 : i32
    %c0_i32_1 = arith.constant 0 : i32
    return %arg0, %c0_i32, %c0_i32_0 : i32, i32, i32
  }
  func.func @transform_2(%arg0: i32) -> (i32, i32, i32) {
    %c0_i32 = arith.constant 0 : i32
    %c0_i32_0 = arith.constant 0 : i32
    %c0_i32_1 = arith.constant 0 : i32
    return %arg0, %c0_i32, %c0_i32_0 : i32, i32, i32
  }
  func.func @transform_3(%arg0: i32) -> (i32, i32) {
    %c0_i32 = arith.constant 0 : i32
    %c0_i32_0 = arith.constant 0 : i32
    %c0_i32_1 = arith.constant 0 : i32
    return %c0_i32, %c0_i32_0 : i32, i32
  }
  func.func @transform_4(%arg0: i32) -> (i32, i32) {
    %c0_i32 = arith.constant 0 : i32
    %c0_i32_0 = arith.constant 0 : i32
    %c0_i32_1 = arith.constant 0 : i32
    return %c0_i32, %c0_i32_0 : i32, i32
  }
  func.func @transform_5(%arg0: i32) -> (i32, i32) {
    %c0_i32 = arith.constant 0 : i32
    %c0_i32_0 = arith.constant 0 : i32
    %c0_i32_1 = arith.constant 0 : i32
    return %c0_i32, %c0_i32_0 : i32, i32
  }
  func.func @transform_6(%arg0: i32) -> (i32, i32) {
    %c0_i32 = arith.constant 0 : i32
    %c0_i32_0 = arith.constant 0 : i32
    %c0_i32_1 = arith.constant 0 : i32
    return %c0_i32, %c0_i32_0 : i32, i32
  }
  func.func @transform_7(%arg0: i32) -> (i32, i32, i32) {
    %c0_i32 = arith.constant 0 : i32
    %c0_i32_0 = arith.constant 0 : i32
    %c0_i32_1 = arith.constant 0 : i32
    %c0_i32_2 = arith.constant 0 : i32
    return %c0_i32, %c0_i32_0, %c0_i32_1 : i32, i32, i32
  }
  func.func @transform_8(%arg0: i32) -> (i32, i32) {
    %c0_i32 = arith.constant 0 : i32
    %c0_i32_0 = arith.constant 0 : i32
    %c0_i32_1 = arith.constant 0 : i32
    return %c0_i32, %c0_i32_0 : i32, i32
  }
  func.func @transform_9(%arg0: i32) -> (i32, i32) {
    %c0_i32 = arith.constant 0 : i32
    %c0_i32_0 = arith.constant 0 : i32
    %c0_i32_1 = arith.constant 0 : i32
    return %c0_i32, %c0_i32_0 : i32, i32
  }
  func.func @transform_10(%arg0: i32) -> (i32, i32) {
    %c0_i32 = arith.constant 0 : i32
    %c0_i32_0 = arith.constant 0 : i32
    %c0_i32_1 = arith.constant 0 : i32
    return %c0_i32, %c0_i32_0 : i32, i32
  }
  func.func @transform_11(%arg0: i32) -> (i32, i32) {
    %c0_i32 = arith.constant 0 : i32
    %c0_i32_0 = arith.constant 0 : i32
    %c0_i32_1 = arith.constant 0 : i32
    return %c0_i32, %c0_i32_0 : i32, i32
  }
  func.func @transform_12(%arg0: i32) -> (i32, i32, i32) {
    %c0_i32 = arith.constant 0 : i32
    %c0_i32_0 = arith.constant 0 : i32
    %c0_i32_1 = arith.constant 0 : i32
    return %arg0, %c0_i32, %c0_i32_0 : i32, i32, i32
  }
}

</mosaic_0001>

<bundles_post_ra>
// kernel: acsm_forward_pallas.1
= control target key start
LH: loop header
LB: loop body
LE: loop exit
PB: predicated region body
PF: predicated region fallthrough
CT: control target
= control target key end

     0   :  { %s2222_s21 = smov 0   ;;  %s2477_s0 = inlined_call_operand.vmem [shape: bf16[2,4,384], index: 0, kind: input, shape index: {}]   ;;  %s2478_s1 = inlined_call_operand.vmem [shape: bf16[2,4,384], index: 1, kind: input, shape index: {}]   ;;  %s2479_s2 = inlined_call_operand.vmem [shape: bf16[2,4,512], index: 2, kind: input, shape index: {}]   ;;  %s2480_s3 = inlined_call_operand.vmem [shape: bf16[8,4], index: 3, kind: input, shape index: {}]   ;;  %s2481_s4 = inlined_call_operand.vmem [shape: f32[8,1], index: 4, kind: input, shape index: {}]   ;;  %s2482_s5 = inlined_call_operand.vmem [shape: bf16[8,4], index: 5, kind: input, shape index: {}]   ;;  %s2483_s6 = inlined_call_operand.vmem [shape: f32[8,1], index: 6, kind: input, shape index: {}]   ;;  %s2484_s7 = inlined_call_operand.vmem [shape: bf16[9,8,4], index: 7, kind: input, shape index: {}]   ;;  %s2485_s8 = inlined_call_operand.vmem [shape: f32[8,1], index: 8, kind: input, shape index: {}]   ;;  %s2486_s9 = inlined_call_operand.vmem [shape: bf16[8,8], index: 9, kind: input, shape index: {}]   ;;  %s2487_s10 = inlined_call_operand.vmem [shape: f32[8,1], index: 10, kind: input, shape index: {}]   ;;  %s2488_s11 = inlined_call_operand.vmem [shape: f32[8,1], index: 11, kind: input, shape index: {}]   ;;  %s2489_s12 = inlined_call_operand.vmem [shape: f32[2,8,384], index: 12, kind: output, shape index: {}]  }
   0x1 LB: > { %s1933_s22 = sadd.s32 4294967295, %s2143_s21   ;;  %p1937_p0 = scmp.ge.s32.totalorder %s2143_s21, 1  ;;  %s2143_s21 = sphi %s2222_s21, %s22_s21  }
   0x2   : > { %p382_p1 = scmp.lt.s32.totalorder %s2143_s21, 3 }
   0x4   : > { %p383_p2 = pnand %p1937_p0, %p382_p1 }
   0x5   : > { %p434_p3 = scmp.lt.s32.totalorder (!%p383_p2), %s1933_s22, 1  ;;  %v470_v0 = vlaneseq (!%p383_p2)  ;;  %v2145_v1 = vmov (!%p383_p2), 1983009808   ;;  %v2146_v3 = vmov (!%p383_p2), 0.0   ;;  %v2147_v5 = vmov (!%p383_p2), 0   ;;  %s2149_s16 = smov (!%p383_p2), 127  }
   0x6   : > { %386 = sbr.rel (%p383_p2) target bundleno = 685 (0x2ad), region = 68  ;;  %v468_v2 = vunpack.c.l.s4 (!%p383_p2), %v2145_v1  ;;  %2014 = vmatprep.subr.bf16.mxu1 (!%p383_p2), %v2146_v3  ;;  %528 = vmatprep.mubr.bf16.mxu0 (!%p383_p2), %v2147_v5  ;;  %vm2148_vm0 = vmmov (!%p383_p2), 0   ;;  %vm486_vm1 = vcmask (!%p383_p2), 1041408   ;;  %v458_v26 = vld [vmem:[%s2480_s3] sm:$0xf] (!%p383_p2)  ;;  %vm482_vm2 = vcmask (!%p383_p2), 31744  }
   0x7   : > { %v471_v4 = vshrl.u32 (!%p383_p2), %v470_v0, 7  ;;  %2109 = vset.pattern.permute.xlu1 (!%p383_p2), %v2147_v5  ;;  %2016 = vmatprep.mubr.msk.bf16.mxu1 (!%p383_p2), %vm2148_vm0, %v2146_v3  ;;  %s2150_s19 = smov (!%p383_p2), 126   ;;  %v577_v29 = vld [vmem:[%s2482_s5] sm:$0xf] (!%p383_p2)  ;;  %s2151_s24 = smov (!%p383_p2), 110   ;;  %vm723_vm3 = vcmask (!%p383_p2), 1039360  }
   0x8   : > { %v469_v6 = vunpack.c.0.s8 (!%p383_p2), %v468_v2  ;;  %2108 = vset.pattern.permute.xlu0 (!%p383_p2), %v2147_v5  ;;  %s2152_s25 = smov (!%p383_p2), 109   ;;  %s2155_s28 = smov (!%p383_p2), 91   ;;  %v459_v30 = vld [vmem:[%s2481_s4] sm:$0xff] (!%p383_p2)  ;;  %vm923_vm4 = vcmask (!%p383_p2), 1031168   ;;  %vm1033_vm5 = vcmask (!%p383_p2), 900096   ;;  %vm1143_vm6 = vcmask (!%p383_p2), 891904  }
   0x9   : > { %s2156_s29 = smov (!%p383_p2), 90   ;;  %v578_v31 = vld [vmem:[%s2483_s6] sm:$0xff] (!%p383_p2)  ;;  %v1956_v63 = vld [vmem:[%s2484_s7 + $0x8] sm:$0xf] (!%p383_p2)  ;;  %vm1253_vm7 = vcmask (!%p383_p2), 883712   ;;  %vm1363_vm8 = vcmask (!%p383_p2), 752640  }
   0xa   : > { %v472_v7 = vsub.s32 (!%p383_p2), %v469_v6, %v471_v4  ;;  %v1720_v32 = vld [vmem:[%s2487_s10] sm:$0xff] (!%p383_p2)  ;;  %vm1473_vm9 = vcmask (!%p383_p2), 744448   ;;  %vm1583_vm10 = vcmask (!%p383_p2), 736256   ;;  %vm1730_vm11 = vcmask (!%p383_p2), 1043456  }
   0xb   : > { %v1683_v33 = vld [vmem:[%s2485_s8] sm:$0xff] (!%p383_p2)  ;;  %vm1726_vm12 = vcmask (!%p383_p2), 64512  }
   0xc   : > { %v1821_v34 = vld [vmem:[%s2488_s11] sm:$0xff] (!%p383_p2) }
   0xd   : > { %s2491_s22 = smov (!%p434_p3, %s1933_s22), 1  ;;  %v1949_v43 = vld [vmem:[%s2484_s7 + $0x4] sm:$0xf]  ;;  %v694_v53 = vld [vmem:[%s2484_s7] sm:$0xf] }
   0xe   : > { %s1989_s23 = sshll.u32 %s2491_s22, 3  ;;  %s2086_s27 = smul.u32 6, %s2491_s22 }
   0xf   : > { %s448_s26 = scalar_lea.vmem %s2479_s2, %s1989_s23 }
  0x10   : > { %v457_v8 = vld [vmem:[%s448_s26] sm:$0xff]  ;;  %s438_s30 = scalar_lea.vmem %s2477_s0, %s2086_s27  ;;  %s443_s15 = scalar_lea.vmem %s2478_s1, %s2086_s27 }
  0x11   : > { %v2243_v9 = vrot.slane %v457_v8, %v472_v7  ;;  %v698_v10 = vcombine.high %v457_v8, %v457_v8  ;;  %v455_v13 = vld [vmem:[%s438_s30] sm:$0x3f]  ;;  %s2153_s26 = smov 108   ;;  %s2154_s27 = smov 92  }
  0x12   : > { %v456_v14 = vld [vmem:[%s443_s15] sm:$0x3f]  ;;  %v473_v15 = vrot.slane %v455_v13, %v472_v7  ;;  %v466_v16 = vcombine.high %v455_v13, %v455_v13 }
  0x13   : > { %715 = vrot.lane.b32.xlu0 %v2243_v9, %s2149_s16  ;;  %v2252_v11 = vrot.slane %v698_v10, %v472_v7  ;;  %v2256_v12 = vcombine.high %v2243_v9, %v2243_v9  ;;  %v592_v17 = vrot.slane %v456_v14, %v472_v7  ;;  %v585_v18 = vcombine.high %v456_v14, %v456_v14 }
  0x14   : > { %v481_v20 = vcombine.high %v473_v15, %v473_v15  ;;  %v488_v21 = vsel %vm486_vm1, %v473_v15, 0  ;;  %v480_v22 = vrot.slane %v466_v16, %v472_v7  ;;  %v824_v46 = vsel %vm486_vm1, %v2243_v9, 0 }
  0x15   : > { %719 = vrot.lane.b32.xlu1 %v2252_v11, %s2149_s16  ;;  %v2261_v19 = vcombine.high %v2252_v11, %v2252_v11  ;;  %v600_v23 = vcombine.high %v592_v17, %v592_v17  ;;  %v599_v25 = vrot.slane %v585_v18, %v472_v7  ;;  %v605_v27 = vsel %vm486_vm1, %v592_v17, 0 }
  0x16   : > { %1943 = vmatprep.subr.msk.bf16.mxu0 %vm486_vm1, %v481_v20  ;;  %v494_v24 = vsel %vm486_vm1, %v480_v22, 0  ;;  %v830_v48 = vsel %vm486_vm1, %v2252_v11, 0 }
  0x17   : > { %717 = vrot.lane.b32.xlu0 %v2256_v12, %s2149_s16  ;;  %497 = vmatpush1.bf16.msra.mxu0 %v488_v21  ;;  %v611_v28 = vsel %vm486_vm1, %v599_v25, 0  ;;  %v1964_v21 = vld [vmem:[%s2484_s7 + $0x10] sm:$0xf] }
  0x18   : > { %2015 = vmatpush3.bf16.msra.mxu1 %v494_v24  ;;  %1946 = vmatprep.subr.msk.bf16.mxu0 %vm486_vm1, %v600_v23 }
  0x19   : > { %721 = vrot.lane.b32.xlu1 %v2261_v19, %s2149_s16  ;;  %2020 = vmatprep.subr.bf16.mxu1 %v2146_v3 }
  0x1a   : > { %1944 = vmatmul.mubr.msk.bf16.vlgmr.msra.gmra.mrb[0].mxu0 %vm482_vm2, %v458_v26 }
  0x1b   : > { %915 = vrot.lane.b32.xlu0 %v2243_v9, %s2150_s19  ;;  %2017 = vmatmul.mubr.msk.bf16.vlgmr.msra.gmra.mrb[0].mxu1 %vm482_vm2, %v458_v26 }
  0x1c   : > { %614 = vmatpush1.bf16.msra.mxu0 %v605_v27  ;;  %645 = vmatprep.mubr.bf16.mxu0 %v2147_v5 }
  0x1d   : > { %917 = vrot.lane.b32.xlu1 %v2256_v12, %s2150_s19  ;;  %2021 = vmatpush3.bf16.msra.mxu1 %v611_v28 }
  0x1e   : > { %2022 = vmatprep.mubr.msk.bf16.mxu1 %vm2148_vm0, %v2146_v3  ;;  %2026 = vmatprep.subr.bf16.mxu1 %v2146_v3 }
  0x1f   : > { %919 = vrot.lane.b32.xlu0 %v2252_v11, %s2150_s19 }
  0x21   : > { %921 = vrot.lane.b32.xlu1 %v2261_v19, %s2150_s19 }
  0x22   : > { %1947 = vmatmul.mubr.msk.bf16.vlgmr.msra.gmra.mrb[4].mxu0 %vm482_vm2, %v577_v29 }
  0x23   : > { %1025 = vrot.lane.b32.xlu0 %v2243_v9, %s2151_s24  ;;  %2023 = vmatmul.mubr.msk.bf16.vlgmr.msra.gmra.mrb[4].mxu1 %vm482_vm2, %v577_v29 }
  0x24   : > { %771 = vmatprep.mubr.bf16.mxu0 %v2147_v5  ;;  %2028 = vmatprep.mubr.msk.bf16.mxu1 %vm2148_vm0, %v2146_v3 }
  0x25   : > { %1027 = vrot.lane.b32.xlu1 %v2256_v12, %s2151_s24 }
  0x27   : > { %1029 = vrot.lane.b32.xlu0 %v2252_v11, %s2151_s24 }
  0x29   : > { %1031 = vrot.lane.b32.xlu1 %v2261_v19, %s2151_s24 }
  0x2b   : > { %1135 = vrot.lane.b32.xlu0 %v2243_v9, %s2152_s25 }
  0x2d   : > { %1137 = vrot.lane.b32.xlu1 %v2256_v12, %s2152_s25 }
  0x2f   : > { %1139 = vrot.lane.b32.xlu0 %v2252_v11, %s2152_s25 }
  0x31   : > { %1141 = vrot.lane.b32.xlu1 %v2261_v19, %s2152_s25 }
  0x33   : > { %1245 = vrot.lane.b32.xlu0 %v2243_v9, %s2153_s26 }
  0x35   : > { %1247 = vrot.lane.b32.xlu1 %v2256_v12, %s2153_s26 }
  0x37   : > { %1249 = vrot.lane.b32.xlu0 %v2252_v11, %s2153_s26 }
  0x39   : > { %1251 = vrot.lane.b32.xlu1 %v2261_v19, %s2153_s26 }
  0x3b   : > { %1355 = vrot.lane.b32.xlu0 %v2243_v9, %s2154_s27 }
  0x3d   : > { %1357 = vrot.lane.b32.xlu1 %v2256_v12, %s2154_s27 }
  0x3f   : > { %1359 = vrot.lane.b32.xlu0 %v2252_v11, %s2154_s27 }
  0x41   : > { %1361 = vrot.lane.b32.xlu1 %v2261_v19, %s2154_s27 }
  0x43   : > { %1465 = vrot.lane.b32.xlu0 %v2243_v9, %s2155_s28 }
  0x45   : > { %1467 = vrot.lane.b32.xlu1 %v2256_v12, %s2155_s28 }
  0x47   : > { %1469 = vrot.lane.b32.xlu0 %v2252_v11, %s2155_s28 }
  0x49   : > { %1471 = vrot.lane.b32.xlu1 %v2261_v19, %s2155_s28  ;;  %s2087_s28 = smul.u32 24, %s2491_s22 }
  0x4b   : > { %1575 = vrot.lane.b32.xlu0 %v2243_v9, %s2156_s29  ;;  %s453_s13 = scalar_lea.vmem %s2489_s12, %s2087_s28 }
  0x4d   : > { %1577 = vrot.lane.b32.xlu1 %v2256_v12, %s2156_s29 }
  0x4f   : > { %1579 = vrot.lane.b32.xlu0 %v2252_v11, %s2156_s29  ;;  %v1960_v11 = vld [vmem:[%s2484_s7 + $0xc] sm:$0xf] }
  0x51   : > { %1581 = vrot.lane.b32.xlu1 %v2261_v19, %s2156_s29 }
  0x53   : > { %462 = vperm.xlu0 %2108, %v459_v30  }
  0x55   : > { %581 = vperm.xlu1 %2109, %v578_v31   ;;  %v1968_v31 = vld [vmem:[%s2484_s7 + $0x14] sm:$0xf] }
  0x57   : > { %1723 = vperm.xlu0 %2108, %v1720_v32  }
  0x59   : > { %1686 = vperm.xlu1 %2109, %v1683_v33  }
  0x5d   : > { %1824 = vperm.xlu1 %2109, %v1821_v34  }
  0x85   : > { %v716_v35 = vpop.permute.xlu0 %715 }
  0x87   : > { %v720_v36 = vpop.permute.xlu1 %719 }
  0x89   : > { %v718_v37 = vpop.permute.xlu0 %717 }
  0x8a   : > { %v724_v38 = vsel %vm723_vm3, %v716_v35, %v718_v37  ;;  %v725_v39 = vsel %vm723_vm3, %v718_v37, %v720_v36 }
  0x8b   : > { %v731_v40 = vsel %vm486_vm1, %v724_v38, 0  ;;  %v722_v41 = vpop.permute.xlu1 %721  ;;  %1950 = vmatprep.subr.msk.bf16.mxu0 %vm486_vm1, %v725_v39 }
  0x8c   : > { %v726_v42 = vsel %vm723_vm3, %v720_v36, %v722_v41  ;;  %740 = vmatpush1.bf16.msra.mxu0 %v731_v40  ;;  %v1972_v41 = vld [vmem:[%s2484_s7 + $0x18] sm:$0xf] }
  0x8d   : > { %v737_v44 = vsel %vm486_vm1, %v726_v42, 0  ;;  %v916_v45 = vpop.permute.xlu0 %915  ;;  %1953 = vmatprep.subr.msk.bf16.mxu0 %vm486_vm1, %v2256_v12 }
  0x8e   : > { %2027 = vmatpush3.bf16.msra.mxu1 %v737_v44 }
  0x8f   : > { %1951 = vmatmul.mubr.msk.bf16.vlgmr.msra.gmra.mrb[8].mxu0 %vm482_vm2, %v1949_v43  ;;  %v918_v47 = vpop.permute.xlu1 %917  ;;  %2032 = vmatprep.subr.bf16.mxu1 %v2146_v3 }
  0x90   : > { %833 = vmatpush1.bf16.msra.mxu0 %v824_v46  ;;  %864 = vmatprep.mubr.bf16.mxu0 %v2147_v5  ;;  %v924_v50 = vsel %vm923_vm4, %v916_v45, %v918_v47 }
  0x91   : > { %2029 = vmatmul.mubr.msk.bf16.vlgmr.msra.gmra.mrb[8].mxu1 %vm482_vm2, %v1949_v43  ;;  %v920_v49 = vpop.permute.xlu0 %919  ;;  %v931_v55 = vsel %vm486_vm1, %v924_v50, 0 }
  0x92   : > { %v925_v51 = vsel %vm923_vm4, %v918_v47, %v920_v49  ;;  %2033 = vmatpush3.bf16.msra.mxu1 %v830_v48  ;;  %2034 = vmatprep.mubr.msk.bf16.mxu1 %vm2148_vm0, %v2146_v3 }
  0x93   : > { %1957 = vmatprep.subr.msk.bf16.mxu0 %vm486_vm1, %v925_v51  ;;  %v922_v52 = vpop.permute.xlu1 %921  ;;  %2038 = vmatprep.subr.bf16.mxu1 %v2146_v3  ;;  %v1976_v51 = vld [vmem:[%s2484_s7 + $0x1c] sm:$0xf] }
  0x94   : > { %v926_v54 = vsel %vm923_vm4, %v920_v49, %v922_v52 }
  0x95   : > { %v1026_v56 = vpop.permute.xlu0 %1025  ;;  %v937_v57 = vsel %vm486_vm1, %v926_v54, 0 }
  0x97   : > { %1954 = vmatmul.mubr.msk.bf16.vlgmr.msra.gmra.mrb[12].mxu0 %vm482_vm2, %v694_v53  ;;  %v1028_v58 = vpop.permute.xlu1 %1027 }
  0x98   : > { %940 = vmatpush1.bf16.msra.mxu0 %v931_v55  ;;  %971 = vmatprep.mubr.bf16.mxu0 %v2147_v5  ;;  %v1034_v60 = vsel %vm1033_vm5, %v1026_v56, %v1028_v58  ;;  %v1980_v55 = vld [vmem:[%s2484_s7 + $0x20] sm:$0xf] }
  0x99   : > { %2035 = vmatmul.mubr.msk.bf16.vlgmr.msra.gmra.mrb[12].mxu1 %vm482_vm2, %v694_v53  ;;  %v1030_v59 = vpop.permute.xlu0 %1029  ;;  %v1041_v1 = vsel %vm486_vm1, %v1034_v60, 0 }
  0x9a   : > { %2039 = vmatpush3.bf16.msra.mxu1 %v937_v57  ;;  %v1035_v61 = vsel %vm1033_vm5, %v1028_v58, %v1030_v59  ;;  %2040 = vmatprep.mubr.msk.bf16.mxu1 %vm2148_vm0, %v2146_v3 }
  0x9b   : > { %1961 = vmatprep.subr.msk.bf16.mxu0 %vm486_vm1, %v1035_v61  ;;  %v1032_v62 = vpop.permute.xlu1 %1031  ;;  %2044 = vmatprep.subr.bf16.mxu1 %v2146_v3 }
  0x9c   : > { %v1036_v0 = vsel %vm1033_vm5, %v1030_v59, %v1032_v62 }
  0x9d   : > { %v1136_v2 = vpop.permute.xlu0 %1135  ;;  %v1047_v4 = vsel %vm486_vm1, %v1036_v0, 0 }
  0x9f   : > { %1958 = vmatmul.mubr.msk.bf16.vlgmr.msra.gmra.mrb[16].mxu0 %vm482_vm2, %v1956_v63  ;;  %v1138_v6 = vpop.permute.xlu1 %1137 }
  0xa0   : > { %1050 = vmatpush1.bf16.msra.mxu0 %v1041_v1  ;;  %1081 = vmatprep.mubr.bf16.mxu0 %v2147_v5  ;;  %v1144_v8 = vsel %vm1143_vm6, %v1136_v2, %v1138_v6 }
  0xa1   : > { %2041 = vmatmul.mubr.msk.bf16.vlgmr.msra.gmra.mrb[16].mxu1 %vm482_vm2, %v1956_v63  ;;  %v1140_v7 = vpop.permute.xlu0 %1139  ;;  %v1151_v13 = vsel %vm486_vm1, %v1144_v8, 0 }
  0xa2   : > { %2045 = vmatpush3.bf16.msra.mxu1 %v1047_v4  ;;  %v1145_v9 = vsel %vm1143_vm6, %v1138_v6, %v1140_v7  ;;  %2046 = vmatprep.mubr.msk.bf16.mxu1 %vm2148_vm0, %v2146_v3 }
  0xa3   : > { %1965 = vmatprep.subr.msk.bf16.mxu0 %vm486_vm1, %v1145_v9  ;;  %v1142_v10 = vpop.permute.xlu1 %1141  ;;  %2050 = vmatprep.subr.bf16.mxu1 %v2146_v3 }
  0xa4   : > { %v1146_v12 = vsel %vm1143_vm6, %v1140_v7, %v1142_v10 }
  0xa5   : > { %v1246_v14 = vpop.permute.xlu0 %1245  ;;  %v1157_v15 = vsel %vm486_vm1, %v1146_v12, 0 }
  0xa7   : > { %1962 = vmatmul.mubr.msk.bf16.vlgmr.msra.gmra.mrb[20].mxu0 %vm482_vm2, %v1960_v11  ;;  %v1248_v16 = vpop.permute.xlu1 %1247 }
  0xa8   : > { %1160 = vmatpush1.bf16.msra.mxu0 %v1151_v13  ;;  %1191 = vmatprep.mubr.bf16.mxu0 %v2147_v5  ;;  %v1254_v18 = vsel %vm1253_vm7, %v1246_v14, %v1248_v16 }
  0xa9   : > { %2047 = vmatmul.mubr.msk.bf16.vlgmr.msra.gmra.mrb[20].mxu1 %vm482_vm2, %v1960_v11  ;;  %v1250_v17 = vpop.permute.xlu0 %1249  ;;  %v1261_v23 = vsel %vm486_vm1, %v1254_v18, 0 }
  0xaa   : > { %2051 = vmatpush3.bf16.msra.mxu1 %v1157_v15  ;;  %v1255_v19 = vsel %vm1253_vm7, %v1248_v16, %v1250_v17  ;;  %2052 = vmatprep.mubr.msk.bf16.mxu1 %vm2148_vm0, %v2146_v3 }
  0xab   : > { %1969 = vmatprep.subr.msk.bf16.mxu0 %vm486_vm1, %v1255_v19  ;;  %v1252_v20 = vpop.permute.xlu1 %1251  ;;  %2056 = vmatprep.subr.bf16.mxu1 %v2146_v3 }
  0xac   : > { %v1256_v22 = vsel %vm1253_vm7, %v1250_v17, %v1252_v20 }
  0xad   : > { %v1356_v24 = vpop.permute.xlu0 %1355  ;;  %v1267_v25 = vsel %vm486_vm1, %v1256_v22, 0 }
  0xaf   : > { %1966 = vmatmul.mubr.msk.bf16.vlgmr.msra.gmra.mrb[24].mxu0 %vm482_vm2, %v1964_v21  ;;  %v1358_v26 = vpop.permute.xlu1 %1357 }
  0xb0   : > { %1270 = vmatpush1.bf16.msra.mxu0 %v1261_v23  ;;  %1301 = vmatprep.mubr.bf16.mxu0 %v2147_v5  ;;  %v1364_v28 = vsel %vm1363_vm8, %v1356_v24, %v1358_v26 }
  0xb1   : > { %2053 = vmatmul.mubr.msk.bf16.vlgmr.msra.gmra.mrb[24].mxu1 %vm482_vm2, %v1964_v21  ;;  %v1360_v27 = vpop.permute.xlu0 %1359  ;;  %v1371_v33 = vsel %vm486_vm1, %v1364_v28, 0 }
  0xb2   : > { %2057 = vmatpush3.bf16.msra.mxu1 %v1267_v25  ;;  %v1365_v29 = vsel %vm1363_vm8, %v1358_v26, %v1360_v27  ;;  %2058 = vmatprep.mubr.msk.bf16.mxu1 %vm2148_vm0, %v2146_v3 }
  0xb3   : > { %1973 = vmatprep.subr.msk.bf16.mxu0 %vm486_vm1, %v1365_v29  ;;  %v1362_v30 = vpop.permute.xlu1 %1361  ;;  %2062 = vmatprep.subr.bf16.mxu1 %v2146_v3 }
  0xb4   : > { %v1366_v32 = vsel %vm1363_vm8, %v1360_v27, %v1362_v30 }
  0xb5   : > { %v1466_v34 = vpop.permute.xlu0 %1465  ;;  %v1377_v35 = vsel %vm486_vm1, %v1366_v32, 0 }
  0xb7   : > { %1970 = vmatmul.mubr.msk.bf16.vlgmr.msra.gmra.mrb[28].mxu0 %vm482_vm2, %v1968_v31  ;;  %v1468_v36 = vpop.permute.xlu1 %1467 }
  0xb8   : > { %1380 = vmatpush1.bf16.msra.mxu0 %v1371_v33  ;;  %1411 = vmatprep.mubr.bf16.mxu0 %v2147_v5  ;;  %v1474_v38 = vsel %vm1473_vm9, %v1466_v34, %v1468_v36 }
  0xb9   : > { %2059 = vmatmul.mubr.msk.bf16.vlgmr.msra.gmra.mrb[28].mxu1 %vm482_vm2, %v1968_v31  ;;  %v1470_v37 = vpop.permute.xlu0 %1469  ;;  %v1481_v43 = vsel %vm486_vm1, %v1474_v38, 0 }
  0xba   : > { %2063 = vmatpush3.bf16.msra.mxu1 %v1377_v35  ;;  %v1475_v39 = vsel %vm1473_vm9, %v1468_v36, %v1470_v37  ;;  %2064 = vmatprep.mubr.msk.bf16.mxu1 %vm2148_vm0, %v2146_v3 }
  0xbb   : > { %1977 = vmatprep.subr.msk.bf16.mxu0 %vm486_vm1, %v1475_v39  ;;  %v1472_v40 = vpop.permute.xlu1 %1471  ;;  %2068 = vmatprep.subr.bf16.mxu1 %v2146_v3 }
  0xbc   : > { %v1476_v42 = vsel %vm1473_vm9, %v1470_v37, %v1472_v40 }
  0xbd   : > { %v1576_v44 = vpop.permute.xlu0 %1575  ;;  %v1487_v45 = vsel %vm486_vm1, %v1476_v42, 0 }
  0xbf   : > { %1974 = vmatmul.mubr.msk.bf16.vlgmr.msra.gmra.mrb[32].mxu0 %vm482_vm2, %v1972_v41  ;;  %v1578_v46 = vpop.permute.xlu1 %1577 }
  0xc0   : > { %1490 = vmatpush1.bf16.msra.mxu0 %v1481_v43  ;;  %1521 = vmatprep.mubr.bf16.mxu0 %v2147_v5  ;;  %v1584_v48 = vsel %vm1583_vm10, %v1576_v44, %v1578_v46 }
  0xc1   : > { %2065 = vmatmul.mubr.msk.bf16.vlgmr.msra.gmra.mrb[32].mxu1 %vm482_vm2, %v1972_v41  ;;  %v1580_v47 = vpop.permute.xlu0 %1579  ;;  %v1591_v53 = vsel %vm486_vm1, %v1584_v48, 0 }
  0xc2   : > { %2069 = vmatpush3.bf16.msra.mxu1 %v1487_v45  ;;  %v1585_v49 = vsel %vm1583_vm10, %v1578_v46, %v1580_v47  ;;  %2070 = vmatprep.mubr.msk.bf16.mxu1 %vm2148_vm0, %v2146_v3 }
  0xc3   : > { %1981 = vmatprep.subr.msk.bf16.mxu0 %vm486_vm1, %v1585_v49  ;;  %v1582_v50 = vpop.permute.xlu1 %1581  ;;  %2074 = vmatprep.subr.bf16.mxu1 %v2146_v3 }
  0xc4   : > { %v1586_v52 = vsel %vm1583_vm10, %v1580_v47, %v1582_v50 }
  0xc5   : > { %v1597_v54 = vsel %vm486_vm1, %v1586_v52, 0 }
  0xc7   : > { %1978 = vmatmul.mubr.msk.bf16.vlgmr.msra.gmra.mrb[36].mxu0 %vm482_vm2, %v1976_v51 }
  0xc8   : > { %1600 = vmatpush1.bf16.msra.mxu0 %v1591_v53  ;;  %1631 = vmatprep.mubr.bf16.mxu0 %v2147_v5 }
  0xc9   : > { %2071 = vmatmul.mubr.msk.bf16.vlgmr.msra.gmra.mrb[36].mxu1 %vm482_vm2, %v1976_v51 }
  0xca   : > { %2075 = vmatpush3.bf16.msra.mxu1 %v1597_v54  ;;  %2076 = vmatprep.mubr.msk.bf16.mxu1 %vm2148_vm0, %v2146_v3 }
  0xcb   : > { %2080 = vmatprep.subr.bf16.mxu1 %v2146_v3 }
  0xcf   : > { %1982 = vmatmul.mubr.msk.bf16.vlgmr.msra.gmra.mrb[40].mxu0 %vm482_vm2, %v1980_v55 }
  0xd0   : > { %1772 = vmatprep.mubr.bf16.mxu0 %v2147_v5 }
  0xd1   : > { %2077 = vmatmul.mubr.msk.bf16.vlgmr.msra.gmra.mrb[40].mxu1 %vm482_vm2, %v1980_v55 }
  0xd2   : > { %2082 = vmatprep.mubr.msk.bf16.mxu1 %vm2148_vm0, %v2146_v3  ;;  %v463_v47 = vpop.permute.xlu0 %462 }
  0xed   : > { %v530_v56 = vpop.f32.mrb[0].mxu0 }
  0xee   : > { %v532_v57 = vpop.f32.mrb[1].mxu0  ;;  %v571_v58 = vpop.f32.mrb[0].mxu1  ;;  %v2452_v50 = vadd.f32 %v530_v56, %v463_v47 }
  0xef   : > { %v534_v59 = vpop.f32.mrb[2].mxu0  ;;  %v2018_v60 = vpop.f32.mrb[1].mxu1  ;;  %v2454_v51 = vadd.f32 %v532_v57, %v463_v47  ;;  %v2456_v53 = vadd.f32 %v571_v58, %v463_v47 }
  0xf0   : > { %v535_v61 = vpop.f32.mrb[3].mxu0  ;;  %v574_v62 = vpop.f32.mrb[2].mxu1 }
  0xf1   : > { %v2019_v63 = vpop.f32.mrb[3].mxu1  ;;  %v1692_v62 = vsub.f32 0.0, %v2452_v50  ;;  %v1694_v56 = vsub.f32 0.0, %v2456_v53 }
  0xf5   : > { %v2446_v0 = vpop.f32.mrb[4].mxu0 }
  0xf6   : > { %v2448_v1 = vpop.f32.mrb[5].mxu0  ;;  %v2450_v2 = vpop.f32.mrb[4].mxu1 }
  0xf7   : > { %v651_v5 = vpop.f32.mrb[6].mxu0  ;;  %v2024_v4 = vpop.f32.mrb[5].mxu1 }
  0xf8   : > { %v652_v6 = vpop.f32.mrb[7].mxu0  ;;  %v691_v7 = vpop.f32.mrb[6].mxu1 }
  0xf9   : > { %v2025_v8 = vpop.f32.mrb[7].mxu1  ;;  %v1693_v6 = vsub.f32 0.0, %v2454_v51 }
  0xfa   : > { %v1695_v8 = vmul.f32 1.442695, %v1692_v62 }
  0xfc   : > { %2113 = vpow2.f32 %v1695_v8 }
 0x162   : > { %v773_v3 = vpop.f32.mrb[8].mxu0 }
 0x163   : > { %v775_v9 = vpop.f32.mrb[9].mxu0 }
 0x164   : > { %v777_v10 = vpop.f32.mrb[10].mxu0  ;;  %v814_v11 = vpop.f32.mrb[8].mxu1 }
 0x165   : > { %v778_v12 = vpop.f32.mrb[11].mxu0  ;;  %v2030_v13 = vpop.f32.mrb[9].mxu1 }
 0x166   : > { %v817_v14 = vpop.f32.mrb[10].mxu1 }
 0x167   : > { %v2031_v15 = vpop.f32.mrb[11].mxu1 }
 0x16a   : > { %v866_v16 = vpop.f32.mrb[12].mxu0 }
 0x16b   : > { %v867_v17 = vadd.f32 %v866_v16, %v773_v3  ;;  %v868_v18 = vpop.f32.mrb[13].mxu0  ;;  %v1697_v3 = vmul.f32 1.442695, %v1693_v6 }
 0x16c   : > { %v869_v19 = vadd.f32 %v868_v18, %v775_v9  ;;  %v870_v20 = vpop.f32.mrb[14].mxu0  ;;  %v907_v21 = vpop.f32.mrb[12].mxu1  ;;  %v1699_v9 = vmul.f32 1.442695, %v1694_v56 }
 0x16d   : > { %v908_v22 = vadd.f32 %v907_v21, %v814_v11  ;;  %v871_v23 = vpop.f32.mrb[15].mxu0  ;;  %v2036_v24 = vpop.f32.mrb[13].mxu1  ;;  %2115 = vpow2.f32 %v1697_v3 }
 0x16e   : > { %v910_v25 = vpop.f32.mrb[14].mxu1  ;;  %2117 = vpow2.f32 %v1699_v9 }
 0x16f   : > { %v2037_v26 = vpop.f32.mrb[15].mxu1 }
 0x172   : > { %v973_v27 = vpop.f32.mrb[16].mxu0 }
 0x173   : > { %v1020_v28 = vadd.f32 %v973_v27, %v867_v17  ;;  %v975_v29 = vpop.f32.mrb[17].mxu0 }
 0x174   : > { %v1021_v30 = vadd.f32 %v975_v29, %v869_v19  ;;  %v977_v31 = vpop.f32.mrb[18].mxu0  ;;  %v1014_v32 = vpop.f32.mrb[16].mxu1 }
 0x175   : > { %v1022_v33 = vadd.f32 %v1014_v32, %v908_v22  ;;  %v978_v34 = vpop.f32.mrb[19].mxu0  ;;  %v2042_v35 = vpop.f32.mrb[17].mxu1 }
 0x176   : > { %v1017_v36 = vpop.f32.mrb[18].mxu1 }
 0x177   : > { %v2043_v37 = vpop.f32.mrb[19].mxu1  ;;  %v582_v36 = vpop.permute.xlu1 %581 }
 0x178   : > { %v648_v62 = vadd.f32 %v2446_v0, %v582_v36  ;;  %v689_v8 = vadd.f32 %v2450_v2, %v582_v36 }
 0x17a   : > { %v1083_v38 = vpop.f32.mrb[20].mxu0 }
 0x17b   : > { %v1130_v39 = vadd.f32 %v1083_v38, %v1020_v28  ;;  %v1085_v40 = vpop.f32.mrb[21].mxu0 }
 0x17c   : > { %v1131_v41 = vadd.f32 %v1085_v40, %v1021_v30  ;;  %v1087_v42 = vpop.f32.mrb[22].mxu0  ;;  %v1124_v43 = vpop.f32.mrb[20].mxu1 }
 0x17d   : > { %v1132_v44 = vadd.f32 %v1124_v43, %v1022_v33  ;;  %v1088_v45 = vpop.f32.mrb[23].mxu0  ;;  %v2048_v46 = vpop.f32.mrb[21].mxu1 }
 0x17e   : > { %v1127_v48 = vpop.f32.mrb[22].mxu1  ;;  %v2114_v30 = vpop.eup %2113 }
 0x17f   : > { %v2049_v49 = vpop.f32.mrb[23].mxu1  ;;  %v2116_v32 = vpop.eup %2115  ;;  %v1701_v34 = vadd.f32 1.0, %v2114_v30 }
 0x180   : > { %v2118_v33 = vpop.eup %2117  ;;  %v1702_v37 = vadd.f32 1.0, %v2116_v32 }
 0x181   : > { %v1703_v40 = vadd.f32 1.0, %v2118_v33  ;;  %2119 = vrcp.f32 %v1701_v34 }
 0x182   : > { %v1193_v52 = vpop.f32.mrb[24].mxu0  ;;  %2121 = vrcp.f32 %v1702_v37 }
 0x183   : > { %v1240_v54 = vadd.f32 %v1193_v52, %v1130_v39  ;;  %v1195_v55 = vpop.f32.mrb[25].mxu0  ;;  %2123 = vrcp.f32 %v1703_v40  ;;  %v1687_v52 = vpop.permute.xlu1 %1686 }
 0x184   : > { %v1241_v59 = vadd.f32 %v1195_v55, %v1131_v41  ;;  %v1197_v60 = vpop.f32.mrb[26].mxu0  ;;  %v1234_v61 = vpop.f32.mrb[24].mxu1 }
 0x185   : > { %v1242_v63 = vadd.f32 %v1234_v61, %v1132_v44  ;;  %v1198_v5 = vpop.f32.mrb[27].mxu0  ;;  %v2054_v4 = vpop.f32.mrb[25].mxu1 }
 0x186   : > { %v1237_v7 = vpop.f32.mrb[26].mxu1 }
 0x187   : > { %v2055_v57 = vpop.f32.mrb[27].mxu1  ;;  %v650_v7 = vadd.f32 %v2448_v1, %v582_v36 }
 0x18a   : > { %v1303_v58 = vpop.f32.mrb[28].mxu0 }
 0x18b   : > { %v1350_v10 = vadd.f32 %v1303_v58, %v1240_v54  ;;  %v1305_v11 = vpop.f32.mrb[29].mxu0 }
 0x18c   : > { %v1351_v12 = vadd.f32 %v1305_v11, %v1241_v59  ;;  %v1307_v13 = vpop.f32.mrb[30].mxu0  ;;  %v1344_v14 = vpop.f32.mrb[28].mxu1 }
 0x18d   : > { %v1352_v15 = vadd.f32 %v1344_v14, %v1242_v63  ;;  %v1308_v16 = vpop.f32.mrb[31].mxu0  ;;  %v2060_v17 = vpop.f32.mrb[29].mxu1 }
 0x18e   : > { %v1347_v18 = vpop.f32.mrb[30].mxu1 }
 0x18f   : > { %v2061_v19 = vpop.f32.mrb[31].mxu1 }
 0x192   : > { %v1413_v20 = vpop.f32.mrb[32].mxu0 }
 0x193   : > { %v1460_v21 = vadd.f32 %v1413_v20, %v1350_v10  ;;  %v1415_v22 = vpop.f32.mrb[33].mxu0  ;;  %v2120_v10 = vpop.eup %2119 }
 0x194   : > { %v1461_v23 = vadd.f32 %v1415_v22, %v1351_v12  ;;  %v1417_v24 = vpop.f32.mrb[34].mxu0  ;;  %v1454_v25 = vpop.f32.mrb[32].mxu1 }
 0x195   : > { %v1462_v26 = vadd.f32 %v1454_v25, %v1352_v15  ;;  %v1418_v27 = vpop.f32.mrb[35].mxu0  ;;  %v2066_v28 = vpop.f32.mrb[33].mxu1 }
 0x196   : > { %v1457_v29 = vpop.f32.mrb[34].mxu1  ;;  %v2122_v12 = vpop.eup %2121 }
 0x197   : > { %v2067_v31 = vpop.f32.mrb[35].mxu1  ;;  %v2124_v15 = vpop.eup %2123 }
 0x198   : > { %v1825_v24 = vpop.permute.xlu1 %1824  ;;  %v1724_v25 = vpop.permute.xlu0 %1723 }
 0x199   : > { %v1827_v27 = vmul.f32 %v1825_v24, %v2452_v50  ;;  %v1828_v31 = vmul.f32 %v1825_v24, %v2454_v51  ;;  %v1829_v32 = vmul.f32 %v1825_v24, %v2456_v53 }
 0x19a   : > { %v1523_v35 = vpop.f32.mrb[36].mxu0 }
 0x19b   : > { %v1570_v38 = vadd.f32 %v1523_v35, %v1460_v21  ;;  %v1525_v39 = vpop.f32.mrb[37].mxu0 }
 0x19c   : > { %v1571_v41 = vadd.f32 %v1525_v39, %v1461_v23  ;;  %v1527_v42 = vpop.f32.mrb[38].mxu0  ;;  %v1564_v43 = vpop.f32.mrb[36].mxu1  ;;  %v1716_v23 = vld [vmem:[%s2486_s9] sm:$0xf] }
 0x19d   : > { %v1572_v44 = vadd.f32 %v1564_v43, %v1462_v26  ;;  %v1528_v45 = vpop.f32.mrb[39].mxu0  ;;  %v2072_v46 = vpop.f32.mrb[37].mxu1 }
 0x19e   : > { %v1567_v47 = vpop.f32.mrb[38].mxu1 }
 0x19f   : > { %v2073_v48 = vpop.f32.mrb[39].mxu1 }
 0x1a2   : > { %v1633_v49 = vpop.f32.mrb[40].mxu0 }
 0x1a3   : > { %v1680_v54 = vadd.f32 %v1633_v49, %v1570_v38  ;;  %v1635_v55 = vpop.f32.mrb[41].mxu0 }
 0x1a4   : > { %v1681_v59 = vadd.f32 %v1635_v55, %v1571_v41  ;;  %v1637_v60 = vpop.f32.mrb[42].mxu0  ;;  %v1674_v61 = vpop.f32.mrb[40].mxu1 }
 0x1a5   : > { %v1689_v63 = vadd.f32 %v1687_v52, %v1680_v54  ;;  %v1682_v5 = vadd.f32 %v1674_v61, %v1572_v44  ;;  %v1638_v4 = vpop.f32.mrb[43].mxu0  ;;  %v2078_v6 = vpop.f32.mrb[41].mxu1 }
 0x1a6   : > { %v1690_v56 = vadd.f32 %v1687_v52, %v1681_v59  ;;  %v1677_v57 = vpop.f32.mrb[42].mxu1 }
 0x1a7   : > { %v1707_v3 = vsub.f32 %v648_v62, %v1689_v63  ;;  %v1691_v58 = vadd.f32 %v1687_v52, %v1682_v5  ;;  %v2079_v9 = vpop.f32.mrb[43].mxu1 }
 0x1a8   : > { %v1708_v11 = vsub.f32 %v650_v7, %v1690_v56 }
 0x1a9   : > { %v1710_v13 = vmul.f32 %v2120_v10, %v1707_v3  ;;  %v1709_v14 = vsub.f32 %v689_v8, %v1691_v58 }
 0x1aa   : > { %v1711_v0 = vmul.f32 %v2122_v12, %v1708_v11 }
 0x1ab   : > { %v1713_v16 = vadd.f32 %v1710_v13, %v1689_v63  ;;  %v1712_v17 = vmul.f32 %v2124_v15, %v1709_v14 }
 0x1ac   : > { %v1714_v18 = vadd.f32 %v1711_v0, %v1690_v56 }
 0x1ad   : > { %v1717_v19 = vpack.c.bf16 %v1713_v16, %v1713_v16  ;;  %v1715_v1 = vadd.f32 %v1712_v17, %v1691_v58 }
 0x1ae   : > { %v1718_v20 = vpack.c.bf16 %v1714_v18, %v1714_v18 }
 0x1af   : > { %v1719_v21 = vpack.c.bf16 %v1715_v1, %v1715_v1  ;;  %v1732_v22 = vsel %vm1730_vm11, %v1717_v19, 0 }
 0x1b0   : > { %1984 = vmatprep.subr.msk.bf16.mxu0 %vm1730_vm11, %v1718_v20 }
 0x1b1   : > { %1741 = vmatpush1.bf16.msra.mxu0 %v1732_v22  ;;  %v1738_v2 = vsel %vm1730_vm11, %v1719_v21, 0 }
 0x1b2   : > { %2081 = vmatpush3.bf16.msra.mxu1 %v1738_v2 }
 0x1b4   : > { %1985 = vmatmul.mubr.msk.bf16.vlgmr.msra.gmra.mrb[44].mxu0 %vm1726_vm12, %v1716_v23 }
 0x1b5   : > { %2083 = vmatmul.mubr.msk.bf16.vlgmr.msra.gmra.mrb[44].mxu1 %vm1726_vm12, %v1716_v23 }
 0x287   : > { %v1774_v26 = vpop.f32.mrb[44].mxu0 }
 0x288   : > { %v1775_v28 = vadd.f32 %v1774_v26, %v1724_v25  ;;  %v1776_v29 = vpop.f32.mrb[45].mxu0  ;;  %v1815_v30 = vpop.f32.mrb[44].mxu1 }
 0x289   : > { %v1777_v33 = vadd.f32 %v1776_v29, %v1724_v25  ;;  %v1816_v34 = vadd.f32 %v1815_v30, %v1724_v25  ;;  %v1778_v35 = vpop.f32.mrb[46].mxu0  ;;  %v2084_v36 = vpop.f32.mrb[45].mxu1 }
 0x28a   : > { %v1830_v37 = vadd.f32 %v1827_v27, %v1775_v28  ;;  %v1779_v38 = vpop.f32.mrb[47].mxu0  ;;  %v1818_v39 = vpop.f32.mrb[46].mxu1 }
 0x28b   : > { %v1831_v40 = vadd.f32 %v1828_v31, %v1777_v33  ;;  %v1832_v41 = vadd.f32 %v1829_v32, %v1816_v34  ;;  %v2085_v42 = vpop.f32.mrb[47].mxu1 }
 0x28c   : > { %v1833_v43 = vsub.f32 0.0, %v1830_v37 }
 0x28d   : > { %v1834_v44 = vsub.f32 0.0, %v1831_v40  ;;  %v1835_v50 = vsub.f32 0.0, %v1832_v41 }
 0x28e   : > { %v1836_v45 = vmul.f32 1.442695, %v1833_v43 }
 0x28f   : > { %v1838_v46 = vmul.f32 1.442695, %v1834_v44  ;;  %v1840_v47 = vmul.f32 1.442695, %v1835_v50 }
 0x290   : > { %2125 = vpow2.f32 %v1836_v45 }
 0x291   : > { %2127 = vpow2.f32 %v1838_v46 }
 0x292   : > { %2129 = vpow2.f32 %v1840_v47 }
 0x29a   : > { %v2126_v51 = vpop.eup %2125 }
 0x29b   : > { %v2128_v53 = vpop.eup %2127  ;;  %v1842_v48 = vadd.f32 1.0, %v2126_v51 }
 0x29c   : > { %v2130_v49 = vpop.eup %2129  ;;  %v1843_v52 = vadd.f32 1.0, %v2128_v53 }
 0x29d   : > { %2131 = vrcp.f32 %v1842_v48  ;;  %v1844_v54 = vadd.f32 1.0, %v2130_v49 }
 0x29e   : > { %2133 = vrcp.f32 %v1843_v52 }
 0x29f   : > { %2135 = vrcp.f32 %v1844_v54 }
 0x2a7   : > { %v2132_v55 = vpop.eup %2131 }
 0x2a8   : > { %v2134_v59 = vpop.eup %2133  ;;  %v1848_v60 = vmul.f32 %v2132_v55, %v1830_v37 }
 0x2a9   : > { %v2136_v61 = vpop.eup %2135  ;;  %v1849_v62 = vmul.f32 %v2134_v59, %v1831_v40 }
 0x2aa   : > { %1851 = vst [vmem:[%s453_s13] sm:$0xff] %v1848_v60  ;;  %v1850_v63 = vmul.f32 %v2136_v61, %v1832_v41 }
 0x2ab   : > { %1852 = vst [vmem:[%s453_s13 + $0x8] sm:$0xff] %v1849_v62 }
 0x2ac   : > { %1853 = vst [vmem:[%s453_s13 + $0x10] sm:$0xff] %v1850_v63 }
 0x2ad PF: > { %s22_s21 = sadd.s32 1, %s2143_s21  }
 0x2ae   : > { %p19_p4 = scmp.ge.s32.totalorder %s22_s21, 4  }
 0x2b0   :  { %21 = sbr.rel (!%p19_p4) target bundleno = 1 (0x1), region = 112 }

</bundles_post_ra>
